<compile_context>
chip_gen: v7x
topology: tpu7x:2x2x1
jax: 0.10.0
libtpu: 0.0.40
codegen_flags: <defaults>
</compile_context>

<pallas_src>
import functools

import jax
import jax.numpy as jnp
from jax.experimental import pallas as pl
from jax.experimental.pallas import tpu as pltpu


def _sublane_multiple(dtype) -> int:
    # Sublane packing granularity for the second-to-last dim.
    return {4: 8, 2: 16, 1: 32}.get(jnp.dtype(dtype).itemsize, 8)


def _round_up(x: int, m: int) -> int:
    return ((x + m - 1) // m) * m


def _tpu_profile():
    """Generation-aware block budget / VMEM cap / TC count."""
    vmem_phys = 128 << 20
    try:
        vmem_phys = int(pltpu.get_tpu_info().vmem_capacity_bytes)
    except Exception:
        pass
    if vmem_phys <= (64 << 20):
        # v7x-class: 64 MiB VMEM per TC, 2 TCs/chip, 3.2 TB/s HBM.
        return {"block_bytes": 8 << 20, "vmem_cap": 40 << 20, "two_core": True}
    # v5e/v6e-class: 128 MiB VMEM, 1 TC/chip.
    return {"block_bytes": 8 << 20, "vmem_cap": 96 << 20, "two_core": False}


def _layernorm_kernel(x_ref, scale_ref, shift_ref, red_ref, o_ref, *,
                      eps, inv_emb, sub_rows, use_matmul_reduce, unroll):
    row_tile, emb_eff = x_ref.shape
    n_sub = row_tile // sub_rows                      # static

    # Hoisted once per grid step (JAX does not CSE broadcast_in_dim in loops).
    scale_b = jnp.broadcast_to(scale_ref[...], (sub_rows, emb_eff))
    shift_b = jnp.broadcast_to(shift_ref[...], (sub_rows, emb_eff))

    if use_matmul_reduce:
        # (emb_eff, N) f32 reduction matrix: ones column for plain row sums, or
        # block-diagonal ones for the lane-folded segmented sums (+ broadcast).
        red = red_ref[...]

        def row_sum(t):
            return jnp.dot(t, red, preferred_element_type=jnp.float32)
    else:
        def row_sum(t):
            return jnp.sum(t, axis=-1, keepdims=True)

    def body(i, carry):
        r0 = pl.multiple_of(i * sub_rows, sub_rows)
        x = x_ref[pl.ds(r0, sub_rows), :].astype(jnp.float32)
        mean = row_sum(x) * inv_emb
        xc = x - mean
        var = row_sum(xc * xc) * inv_emb              # unbiased=False
        norm = xc * jax.lax.rsqrt(var + eps)
        o_ref[pl.ds(r0, sub_rows), :] = (scale_b * norm + shift_b).astype(o_ref.dtype)
        return carry

    jax.lax.fori_loop(0, n_sub, body, 0, unroll=unroll)


def layernorm(x, scale, shift, *, eps=1e-5,
              target_block_bytes=None,        # None -> generation-aware default
              sub_slab_bytes=256 << 10):      # ~256 KiB f32 working set per sub-slab
    """x: [..., emb]; scale/shift: [emb]. Returns same shape/dtype as x."""
    orig_shape = x.shape
    emb = int(orig_shape[-1])
    x2 = x.reshape(-1, emb)
    n_rows = int(x2.shape[0])
    dtype = x.dtype
    itemsize = jnp.dtype(dtype).itemsize

    prof = _tpu_profile()
    if target_block_bytes is None:
        target_block_bytes = prof["block_bytes"]
    vmem_cap = prof["vmem_cap"]
    two_core = prof["two_core"]

    scale_f = scale.reshape(-1).astype(jnp.float32)
    shift_f = shift.reshape(-1).astype(jnp.float32)

    # ---- layout / reduction strategy -------------------------------------
    g = 128 // emb if (emb < 128 and 128 % emb == 0) else 1
    fold = g > 1 and n_rows > 0 and (n_rows % g == 0)
    if fold:
        # Lane-fold: pack g rows into one 128-lane row; segmented sums via a
        # block-diagonal ones matrix on the MXU (lane-dense loads AND stores).
        emb_eff = 128
        n_rows_eff = n_rows // g
        x_eff = x2.reshape(n_rows_eff, emb_eff)
        scale_eff = jnp.tile(scale_f, g).reshape(1, emb_eff)
        shift_eff = jnp.tile(shift_f, g).reshape(1, emb_eff)
        lane = jnp.arange(emb_eff, dtype=jnp.int32)
        red = (lane[:, None] // emb == lane[None, :] // emb).astype(jnp.float32)
        use_matmul_reduce = True
    else:
        emb_eff = emb
        n_rows_eff = n_rows
        x_eff = x2
        scale_eff = scale_f.reshape(1, emb)
        shift_eff = shift_f.reshape(1, emb)
        # Offload the two cross-lane row reductions to the idle MXU for
        # small/medium emb (keeps v7x memory-bound); jnp.sum for large emb.
        use_matmul_reduce = (emb % 128 == 0 and emb <= 512)
        red = jnp.ones((emb, 1), jnp.float32)   # unread dummy on the sum path
    # TODO(synk): for emb < 128 with n_rows % (128//emb) != 0 we fall back to
    # the lane-sparse path instead of padding the row count; fine for GPT sizes.

    sub_min = _sublane_multiple(dtype)
    rows_needed = _round_up(max(n_rows_eff, 1), sub_min)

    # Sub-slab rows: bounded f32 working set, aligned to sublane packing.
    sub_rows = max(sub_min, (sub_slab_bytes // (emb_eff * 4)) // sub_min * sub_min)
    sub_rows = min(sub_rows, rows_needed)

    # Row tile (DMA block): sized from the byte budget, multiple of sub_rows,
    # no bigger than needed to cover all rows.
    row_tile = max(sub_rows,
                   (target_block_bytes // (emb_eff * itemsize)) // sub_rows * sub_rows)
    row_tile = min(row_tile, _round_up(rows_needed, sub_rows))

    # 2-TC chips: guarantee >= 2 grid steps so ("parallel",) uses both cores.
    if two_core and n_rows_eff > sub_rows:
        half = _round_up(-(-n_rows_eff // 2), sub_rows)
        row_tile = min(row_tile, max(half, sub_rows))

    # Keep double-buffered in+out blocks plus temporaries under the VMEM cap:
    # clamp the block itself, not only the declared limit.
    red_bytes = int(red.size) * 4
    temp_bytes = 12 * sub_rows * emb_eff * 4 + red_bytes + (2 << 20)
    max_block_bytes = max((vmem_cap - temp_bytes) // 4, sub_min * emb_eff * itemsize)
    max_rows_vmem = max(sub_rows,
                        (max_block_bytes // (emb_eff * itemsize)) // sub_rows * sub_rows)
    row_tile = min(row_tile, max_rows_vmem)

    block_bytes = row_tile * emb_eff * itemsize
    vmem_limit = int(min(max(4 * block_bytes + temp_bytes, 16 << 20), vmem_cap))

    n_sub = row_tile // sub_rows
    if n_sub <= 8:
        unroll = True
    elif n_sub % 4 == 0:
        unroll = 4
    elif n_sub % 2 == 0:
        unroll = 2
    else:
        unroll = 1

    grid = (pl.cdiv(n_rows_eff, row_tile),)

    kernel = functools.partial(
        _layernorm_kernel, eps=float(eps), inv_emb=1.0 / emb, sub_rows=sub_rows,
        use_matmul_reduce=use_matmul_reduce, unroll=unroll)

    out = pl.pallas_call(
        kernel,
        out_shape=jax.ShapeDtypeStruct((n_rows_eff, emb_eff), dtype),
        grid_spec=pltpu.PrefetchScalarGridSpec(
            num_scalar_prefetch=0,
            grid=grid,
            in_specs=[
                pl.BlockSpec((row_tile, emb_eff), lambda i: (i, 0)),
                pl.BlockSpec((1, emb_eff), lambda i: (0, 0)),
                pl.BlockSpec((1, emb_eff), lambda i: (0, 0)),
                pl.BlockSpec(red.shape, lambda i: (0, 0)),
            ],
            out_specs=pl.BlockSpec((row_tile, emb_eff), lambda i: (i, 0)),
        ),
        compiler_params=pltpu.CompilerParams(
            dimension_semantics=("parallel",),
            vmem_limit_bytes=vmem_limit,
        ),
    )(x_eff, scale_eff, shift_eff, red)

    return out.reshape(orig_shape)


def layernorm_ref(x, scale, shift, eps=1e-5):
    xf = x.astype(jnp.float32)
    mean = jnp.mean(xf, axis=-1, keepdims=True)
    var = jnp.mean((xf - mean) ** 2, axis=-1, keepdims=True)
    norm = (xf - mean) / jnp.sqrt(var + eps)
    return (scale * norm + shift).astype(x.dtype)


if __name__ == "__main__":
    key = jax.random.PRNGKey(0)

    # 1) Module-sized case (batch, seq, emb_dim) with emb_dim < 128:
    #    exercises the lane-folded path (4 rows per 128-lane row at emb=32).
    batch, seq, emb_dim = 2, 8, 32
    x = jax.random.normal(key, (batch, seq, emb_dim), dtype=jnp.float32)
    scale = jnp.ones((emb_dim,), dtype=jnp.float32)    # nn.Parameter(torch.ones)
    shift = jnp.zeros((emb_dim,), dtype=jnp.float32)   # nn.Parameter(torch.zeros)
    out = jax.block_until_ready(layernorm(x, scale, shift))
    ref = layernorm_ref(x, scale, shift)
    assert out.shape == x.shape and out.dtype == x.dtype
    assert jnp.allclose(out, ref, atol=1e-5, rtol=1e-5)

    # 2) emb=128: multi-block grid with a ragged last block (300 rows, 128-row
    #    tiles via small budgets) -> MXU ones-column reductions, sub-slab loop,
    #    masked tail stores.
    k1, k2, k3 = jax.random.split(key, 3)
    xb = jax.random.normal(k1, (3, 100, 128), dtype=jnp.float32)
    sb = 1.0 + 0.1 * jax.random.normal(k2, (128,), dtype=jnp.float32)
    bb = 0.1 * jax.random.normal(k3, (128,), dtype=jnp.float32)
    outb = jax.block_until_ready(
        layernorm(xb, sb, bb, target_block_bytes=64 << 10, sub_slab_bytes=8 << 10))
    assert jnp.allclose(outb, layernorm_ref(xb, sb, bb), atol=1e-5, rtol=1e-5)

    # 3) GPT-sized emb (768): exercises the plain jnp.sum reduction path.
    k4, k5, k6 = jax.random.split(k1, 3)
    xc = jax.random.normal(k4, (2, 8, 768), dtype=jnp.float32)
    sc = 1.0 + 0.1 * jax.random.normal(k5, (768,), dtype=jnp.float32)
    bc = 0.1 * jax.random.normal(k6, (768,), dtype=jnp.float32)
    outc = jax.block_until_ready(layernorm(xc, sc, bc))
    assert jnp.allclose(outc, layernorm_ref(xc, sc, bc), atol=2e-5, rtol=2e-5)

    print("KERNEL_OK")
</pallas_src>

<mosaic_0001>
module attributes {stable_mosaic.version = 11 : i64} {
  func.func @_layernorm_kernel(%arg0: i32, %arg1: memref<8x128xf32, #tpu.memory_space<vmem>>, %arg2: memref<1x128xf32, #tpu.memory_space<vmem>>, %arg3: memref<1x128xf32, #tpu.memory_space<vmem>>, %arg4: memref<128x128xf32, #tpu.memory_space<vmem>>, %arg5: memref<8x128xf32, #tpu.memory_space<vmem>>) attributes {dimension_semantics = [#tpu.dimension_semantics<parallel>], iteration_bounds = array<i64: 1>, scalar_prefetch = 0 : i64, scratch_operands = 0 : i64, tpu.core_type = #tpu.core_type<tc>, window_params = [{transform_indices = @transform_0, window_bounds = array<i64: 8, 128>}, {pipeline_mode = #tpu.pipeline_mode<synchronous>, transform_indices = @transform_1, window_bounds = array<i64: 1, 128>}, {pipeline_mode = #tpu.pipeline_mode<synchronous>, transform_indices = @transform_2, window_bounds = array<i64: 1, 128>}, {pipeline_mode = #tpu.pipeline_mode<synchronous>, transform_indices = @transform_3, window_bounds = array<i64: 128, 128>}, {transform_indices = @transform_4, window_bounds = array<i64: 8, 128>}]} {
    %c0 = arith.constant 0 : index
    %c0_0 = arith.constant 0 : index
    %0 = vector.load %arg2[%c0, %c0_0] : memref<1x128xf32, #tpu.memory_space<vmem>>, vector<1x128xf32>
    %1 = vector.shape_cast %0 : vector<1x128xf32> to vector<1x128xf32>
    %2 = vector.broadcast %1 : vector<1x128xf32> to vector<8x128xf32>
    %c0_1 = arith.constant 0 : index
    %c0_2 = arith.constant 0 : index
    %3 = vector.load %arg3[%c0_1, %c0_2] : memref<1x128xf32, #tpu.memory_space<vmem>>, vector<1x128xf32>
    %4 = vector.shape_cast %3 : vector<1x128xf32> to vector<1x128xf32>
    %5 = vector.broadcast %4 : vector<1x128xf32> to vector<8x128xf32>
    %c0_3 = arith.constant 0 : index
    %c0_4 = arith.constant 0 : index
    %6 = vector.load %arg4[%c0_3, %c0_4] : memref<128x128xf32, #tpu.memory_space<vmem>>, vector<128x128xf32>
    %c0_i32 = arith.constant 0 : i32
    %c8_i32 = arith.constant 8 : i32
    %7 = arith.muli %c0_i32, %c8_i32 : i32
    %8 = tpu.assume_multiple %7, 8 : i32
    %9 = arith.index_cast %8 : i32 to index
    %c0_5 = arith.constant 0 : index
    %10 = vector.load %arg1[%9, %c0_5] : memref<8x128xf32, #tpu.memory_space<vmem>>, vector<8x128xf32>
    %cst = arith.constant dense<0.000000e+00> : vector<8x128xf32>
    %11 = tpu.matmul %10, %6, %cst {dimension_numbers = #tpu.dot_dimension_numbers<[1], [0], [0], [1], [0, 0, 1, 1], [], []>} : vector<8x128xf32>, vector<128x128xf32>, vector<8x128xf32> -> vector<8x128xf32>
    %cst_6 = arith.constant 3.125000e-02 : f32
    %12 = vector.broadcast %cst_6 : f32 to vector<8x128xf32>
    %13 = arith.mulf %11, %12 : vector<8x128xf32>
    %14 = arith.subf %10, %13 : vector<8x128xf32>
    %15 = arith.mulf %14, %14 : vector<8x128xf32>
    %cst_7 = arith.constant dense<0.000000e+00> : vector<8x128xf32>
    %16 = tpu.matmul %15, %6, %cst_7 {dimension_numbers = #tpu.dot_dimension_numbers<[1], [0], [0], [1], [0, 0, 1, 1], [], []>} : vector<8x128xf32>, vector<128x128xf32>, vector<8x128xf32> -> vector<8x128xf32>
    %cst_8 = arith.constant 3.125000e-02 : f32
    %17 = vector.broadcast %cst_8 : f32 to vector<8x128xf32>
    %18 = arith.mulf %16, %17 : vector<8x128xf32>
    %cst_9 = arith.constant 9.99999974E-6 : f32
    %19 = vector.broadcast %cst_9 : f32 to vector<8x128xf32>
    %20 = arith.addf %18, %19 : vector<8x128xf32>
    %21 = math.rsqrt %20 : vector<8x128xf32>
    %22 = arith.mulf %14, %21 : vector<8x128xf32>
    %23 = arith.mulf %2, %22 : vector<8x128xf32>
    %24 = arith.addf %23, %5 : vector<8x128xf32>
    %25 = arith.index_cast %8 : i32 to index
    %c0_10 = arith.constant 0 : index
    %26 = vector.load %arg5[%25, %c0_10] : memref<8x128xf32, #tpu.memory_space<vmem>>, vector<8x128xf32>
    tpu.vector_store %arg5[%25, %c0_10], %24 {strides = array<i32>} : memref<8x128xf32, #tpu.memory_space<vmem>>, vector<8x128xf32>,
    %c1_i32 = arith.constant 1 : i32
    return
  }
  func.func @transform_0(%arg0: i32) -> (i32, i32) {
    %c0_i32 = arith.constant 0 : i32
    %c0_i32_0 = arith.constant 0 : i32
    return %arg0, %c0_i32 : i32, i32
  }
  func.func @transform_1(%arg0: i32) -> (i32, i32) {
    %c0_i32 = arith.constant 0 : i32
    %c0_i32_0 = arith.constant 0 : i32
    %c0_i32_1 = arith.constant 0 : i32
    return %c0_i32, %c0_i32_0 : i32, i32
  }
  func.func @transform_2(%arg0: i32) -> (i32, i32) {
    %c0_i32 = arith.constant 0 : i32
    %c0_i32_0 = arith.constant 0 : i32
    %c0_i32_1 = arith.constant 0 : i32
    return %c0_i32, %c0_i32_0 : i32, i32
  }
  func.func @transform_3(%arg0: i32) -> (i32, i32) {
    %c0_i32 = arith.constant 0 : i32
    %c0_i32_0 = arith.constant 0 : i32
    %c0_i32_1 = arith.constant 0 : i32
    return %c0_i32, %c0_i32_0 : i32, i32
  }
  func.func @transform_4(%arg0: i32) -> (i32, i32) {
    %c0_i32 = arith.constant 0 : i32
    %c0_i32_0 = arith.constant 0 : i32
    return %arg0, %c0_i32 : i32, i32
  }
}

</mosaic_0001>

<bundles_post_ra>
// kernel: tpu_custom_call.1
= control target key start
LH: loop header
LB: loop body
LE: loop exit
PB: predicated region body
PF: predicated region fallthrough
CT: control target
= control target key end

     0   :  { %9 = vsyncpa [#allocation3], 0  ;;  %s566_s0 = inlined_call_operand.hbm [shape: f32[4,128], index: 0, kind: input, shape index: {}]   ;;  %s567_s1 = inlined_call_operand.vmem [shape: f32[1,128], index: 1, kind: input, shape index: {}]   ;;  %s568_s2 = inlined_call_operand.vmem [shape: f32[1,128], index: 2, kind: input, shape index: {}]   ;;  %s569_s3 = inlined_call_operand.hbm [shape: f32[128,128], index: 3, kind: input, shape index: {}]   ;;  %s570_s4 = inlined_call_operand.hbm [shape: f32[4,128], index: 4, kind: output, shape index: {}]  }
   0x1   :  { %10 = vsyncpa [#allocation6], 0 }
   0x2   :  { %11 = vsyncpa [#allocation4], 0 }
   0x3   :  { %16 = vsyncadd [#allocation3], 64  ;;  %s483_s15 = smov [#allocation2]   ;;  %s411_s19 = scalar_lea.hbm %s566_s0, 64 }
   0x4   :  { %s17_s16 = sshll.u32 %s483_s15, 4  ;;  %p412_p0 = scmp.ne.s32.totalorder %s566_s0, %s411_s19  ;;  %s18_s16 = int_to_ptr.vmem [resolvable:$true] %s17_s16 }
   0x5   :  { %p415_p1 = scmp.lt.u32.totalorder %s411_s19, %s566_s0 }
   0x7   :  { %p417_p2 = pnand %p415_p1, %p412_p0 }
   0x9   :  { %420 = shalt.err (!%p417_p2)
}
   0xa   :  { %s421_s24 = scalar_lea.vmem %s18_s16, 64  ;;  %s425_s25 = scalar_lea.vmem %s18_s16, 128 }
   0xb   :  { %p422_p3 = scmp.ne.s32.totalorder %s18_s16, %s421_s24  ;;  %p426_p4 = scmp.lt.s32.totalorder %s18_s16, %s18_s16 }
   0xc   :  { %p427_p5 = scmp.lt.s32.totalorder %s425_s25, %s421_s24 }
   0xe   :  { %p428_p6 = por %p427_p5, %p426_p4 }
  0x10   :  { %p429_p7 = pnand %p428_p6, %p422_p3 }
  0x12   :  { %432 = shalt.err (!%p429_p7)
}
  0x13   :  { %s484_s26 = smov 64   ;;  %s485_s27 = smov 4  }
  0x14   :  { %23 = dma.hbm_to_vmem [thread:$0]  %s566_s0, 64, %s18_s16, [#allocation3], %s484_s26, %s484_s26, %s485_s27  }
  0x15   :  { %s486_s30 = smov [#allocation5]   ;;  %s433_s8 = scalar_lea.hbm %s569_s3, 2048 }
  0x16   :  { %s33_s5 = sshll.u32 %s486_s30, 4  ;;  %p434_p8 = scmp.ne.s32.totalorder %s569_s3, %s433_s8  ;;  %s34_s5 = int_to_ptr.vmem [resolvable:$true] %s33_s5 }
  0x17   :  { %p437_p9 = scmp.lt.u32.totalorder %s433_s8, %s569_s3 }
  0x19   :  { %p439_p10 = pnand %p437_p9, %p434_p8 }
  0x1b   :  { %442 = shalt.err (!%p439_p10)
}
  0x1c   :  { %s443_s13 = scalar_lea.vmem %s34_s5, 2048  ;;  %p448_p12 = scmp.lt.s32.totalorder %s34_s5, %s34_s5 }
  0x1d   :  { %p444_p11 = scmp.ne.s32.totalorder %s34_s5, %s443_s13  ;;  %p449_p13 = scmp.lt.s32.totalorder %s443_s13, %s443_s13 }
  0x1f   :  { %p450_p0 = por %p449_p13, %p448_p12 }
  0x21   :  { %p451_p1 = pnand %p450_p0, %p444_p11 }
  0x23   :  { %454 = shalt.err (!%p451_p1)
}
  0x24   :  { %s487_s0 = smov 128   ;;  %s488_s14 = smov 8  }
  0x25   :  { %39 = dma.hbm_to_vmem [thread:$0]  %s569_s3, 2048, %s34_s5, [#allocation6], %s487_s0, %s487_s0, %s488_s14  }
  0x26   :  { %477 = dma.done.wait [#allocation3], 128  }
  0x27   :  { %478 = vsyncadd [#allocation3], 4294967168 }
  0x28   :  { %479 = dma.done.wait [#allocation6], 2048  }
  0x29   :  { %480 = vsyncadd [#allocation6], 4294965248  ;;  %v489_v0 = vmov 0.0|0.0   ;;  %vm490_vm0 = vmmov 0   ;;  %v491_v1 = vmov 0.0   ;;  %v60_v2 = vld [vmem:[#allocation5] sm:$0xff] }
  0x2a   :  { %351 = vmatprep.subr.bf16.mxu0 %v489_v0  ;;  %313 = vmatprep.mubr.msk.f32.mxu0 %vm490_vm0, %v491_v1  ;;  %v61_v3 = vld [vmem:[#allocation5 + $0x8] sm:$0xff]  ;;  %v62_v4 = vld [vmem:[#allocation5 + $0x10] sm:$0xff]  ;;  %v63_v6 = vld [vmem:[#allocation5 + $0x18] sm:$0xff] }
  0x2b   :  { %375 = vmatprep.subr.bf16.mxu1 %v489_v0  ;;  %348 = vmatprep.mubr.msk.f32.mxu1 %vm490_vm0, %v491_v1  ;;  %v352_v5 = vpack.c.bf16 %v61_v3, %v60_v2  ;;  %v355_v7 = vpack.c.bf16 %v63_v6, %v62_v4  ;;  %v64_v8 = vld [vmem:[#allocation5 + $0x20] sm:$0xff]  ;;  %v65_v9 = vld [vmem:[#allocation5 + $0x28] sm:$0xff]  ;;  %v66_v11 = vld [vmem:[#allocation5 + $0x30] sm:$0xff] }
  0x2c   :  { %v358_v10 = vpack.c.bf16 %v65_v9, %v64_v8  ;;  %v67_v12 = vld [vmem:[#allocation5 + $0x38] sm:$0xff]  ;;  %v68_v14 = vld [vmem:[#allocation5 + $0x40] sm:$0xff]  ;;  %v69_v15 = vld [vmem:[#allocation5 + $0x48] sm:$0xff] }
  0x2d   :  { %353 = vmatpush3.bf16.msra.mxu0 %v352_v5  ;;  %377 = vmatpush3.bf16.msra.mxu1 %v352_v5  ;;  %v361_v13 = vpack.c.bf16 %v67_v12, %v66_v11  ;;  %v364_v16 = vpack.c.bf16 %v69_v15, %v68_v14  ;;  %v70_v17 = vld [vmem:[#allocation5 + $0x50] sm:$0xff]  ;;  %v71_v18 = vld [vmem:[#allocation5 + $0x58] sm:$0xff]  ;;  %v72_v20 = vld [vmem:[#allocation5 + $0x60] sm:$0xff] }
  0x2e   :  { %354 = vmatprep.subr.bf16.mxu0 %v489_v0  ;;  %378 = vmatprep.subr.bf16.mxu1 %v489_v0  ;;  %v367_v19 = vpack.c.bf16 %v71_v18, %v70_v17  ;;  %v73_v21 = vld [vmem:[#allocation5 + $0x68] sm:$0xff]  ;;  %v74_v23 = vld [vmem:[#allocation5 + $0x70] sm:$0xff]  ;;  %v75_v24 = vld [vmem:[#allocation5 + $0x78] sm:$0xff] }
  0x2f   :  { %v370_v22 = vpack.c.bf16 %v73_v21, %v72_v20  ;;  %v373_v25 = vpack.c.bf16 %v75_v24, %v74_v23  ;;  %v76_v26 = vld [vmem:[#allocation2] sm:$0xff] }
  0x30   :  { %v245_v37 = vld [vmem:[%s567_s1] ss:$0 sm:$0xff] }
  0x31   :  { %356 = vmatpush3.bf16.msra.mxu0 %v355_v7  ;;  %380 = vmatpush3.bf16.msra.mxu1 %v355_v7  ;;  %v246_v39 = vld [vmem:[%s568_s2] ss:$0 sm:$0xff] }
  0x32   :  { %357 = vmatprep.subr.bf16.mxu0 %v489_v0  ;;  %381 = vmatprep.subr.bf16.mxu1 %v489_v0 }
  0x35   :  { %359 = vmatpush3.bf16.msra.mxu0 %v358_v10  ;;  %383 = vmatpush3.bf16.msra.mxu1 %v358_v10 }
  0x36   :  { %360 = vmatprep.subr.bf16.mxu0 %v489_v0  ;;  %384 = vmatprep.subr.bf16.mxu1 %v489_v0 }
  0x39   :  { %362 = vmatpush3.bf16.msra.mxu0 %v361_v13  ;;  %386 = vmatpush3.bf16.msra.mxu1 %v361_v13 }
  0x3a   :  { %363 = vmatprep.subr.bf16.mxu0 %v489_v0  ;;  %387 = vmatprep.subr.bf16.mxu1 %v489_v0 }
  0x3d   :  { %365 = vmatpush3.bf16.msra.mxu0 %v364_v16  ;;  %389 = vmatpush3.bf16.msra.mxu1 %v364_v16 }
  0x3e   :  { %366 = vmatprep.subr.bf16.mxu0 %v489_v0  ;;  %390 = vmatprep.subr.bf16.mxu1 %v489_v0 }
  0x41   :  { %368 = vmatpush3.bf16.msra.mxu0 %v367_v19  ;;  %392 = vmatpush3.bf16.msra.mxu1 %v367_v19 }
  0x42   :  { %369 = vmatprep.subr.bf16.mxu0 %v489_v0  ;;  %393 = vmatprep.subr.bf16.mxu1 %v489_v0 }
  0x45   :  { %371 = vmatpush3.bf16.msra.mxu0 %v370_v22  ;;  %395 = vmatpush3.bf16.msra.mxu1 %v370_v22 }
  0x46   :  { %372 = vmatprep.subr.bf16.mxu0 %v489_v0  ;;  %396 = vmatprep.subr.bf16.mxu1 %v489_v0 }
  0x49   :  { %374 = vmatpush3.bf16.msra.mxu0 %v373_v25  ;;  %398 = vmatpush3.bf16.msra.mxu1 %v373_v25 }
  0x4c   :  { %314 = vmatmul.mubr.f32.vlgmr.msra.gmra.mrb[0].mxu0 %v76_v26 }
 0x11f   :  { %v143_v27 = vpop.f32.mrb[0].mxu0 }
 0x120   :  { %v147_v28 = vmul.f32 0.03125, %v143_v27  ;;  %v315_v29 = vpop.f32.mrb[1].mxu0 }
 0x122   :  { %v148_v30 = vsub.f32 %v76_v26, %v147_v28 }
 0x124   :  { %v149_v31 = vmul.f32 %v148_v30, %v148_v30 }
 0x126   :  { %349 = vmatmul.mubr.f32.vlgmr.msra.gmra.mrb[0].mxu1 %v149_v31 }
 0x1f9   :  { %v216_v32 = vpop.f32.mrb[0].mxu1 }
 0x1fa   :  { %v220_v33 = vmul.f32 0.03125, %v216_v32  ;;  %v350_v34 = vpop.f32.mrb[1].mxu1 }
 0x1fc   :  { %v221_v35 = vadd.f32 1e-05, %v220_v33 }
 0x1fe   :  { %409 = vrsqrt.f32 %v221_v35 }
 0x208   :  { %v410_v36 = vpop.eup %409 }
 0x209   :  { %v223_v38 = vmul.f32 %v410_v36, %v148_v30 }
 0x20b   :  { %v224_v40 = vmul.f32 %v245_v37, %v223_v38 }
 0x20d   :  { %v225_v41 = vadd.f32 %v246_v39, %v224_v40 }
 0x20f   :  { %226 = vst [vmem:[#allocation7] sm:$0xff] %v225_v41 }
 0x210   :  { %231 = vsyncadd [#allocation4], 64  ;;  %s492_s20 = smov [#allocation7]  }
 0x211   :  { %s232_s21 = sshll.u32 %s492_s20, 4  ;;  %s233_s21 = int_to_ptr.vmem [resolvable:$true] %s232_s21 }
 0x212   :  { %s455_s22 = scalar_lea.vmem %s233_s21, 64  ;;  %s459_s23 = scalar_lea.vmem %s233_s21, 128 }
 0x213   :  { %p456_p2 = scmp.ne.s32.totalorder %s233_s21, %s455_s22  ;;  %p460_p3 = scmp.lt.s32.totalorder %s233_s21, %s233_s21 }
 0x214   :  { %p461_p4 = scmp.lt.s32.totalorder %s459_s23, %s455_s22 }
 0x216   :  { %p462_p5 = por %p461_p4, %p460_p3 }
 0x218   :  { %p463_p6 = pnand %p462_p5, %p456_p2 }
 0x21a   :  { %466 = shalt.err (!%p463_p6)
}
 0x21b   :  { %s467_s25 = scalar_lea.hbm %s570_s4, 64 }
 0x21c   :  { %p468_p7 = scmp.ne.s32.totalorder %s570_s4, %s467_s25  ;;  %p471_p8 = scmp.lt.u32.totalorder %s467_s25, %s570_s4 }
 0x21e   :  { %p473_p9 = pnand %p471_p8, %p468_p7 }
 0x220   :  { %476 = shalt.err (!%p473_p9)
}
 0x221   :  { %238 = dma.vmem_to_hbm [thread:$0]  %s233_s21, 64, %s570_s4, [#allocation4], %s484_s26, %s484_s26, %s485_s27  }
 0x222   :  { %481 = dma.done.wait [#allocation4], 128  }
 0x223   :  { %482 = vsyncadd [#allocation4], 4294967168 }
 0x224   :  { %242 = vsyncpa [#allocation3], 1 }
 0x225   :  { %243 = vsyncpa [#allocation6], 1 }
 0x226   :  { %244 = vsyncpa [#allocation4], 1 }

</bundles_post_ra>
